<compile_context>
chip_gen: v7x
topology: tpu7x:2x2x1
jax: 0.10.0
libtpu: 0.0.40
codegen_flags: <defaults>
</compile_context>

<pallas_src>
import functools

import jax
import jax.numpy as jnp
from jax.experimental import pallas as pl
from jax.experimental.pallas import tpu as pltpu


# --------------------------------------------------------------------------- #
# Kernels
# --------------------------------------------------------------------------- #
def _ffn_kernel_single(x_ref, w1_ref, b1_ref, w2_ref, b2_ref, o_ref):
    """Single hidden tile: fc1 -> ReLU -> fc2 with no accumulator scratch."""
    h = jnp.dot(x_ref[...], w1_ref[...], preferred_element_type=jnp.float32)
    h = jnp.maximum(h + b1_ref[...], 0.0)
    y = jnp.dot(h.astype(w2_ref.dtype), w2_ref[...],
                preferred_element_type=jnp.float32)
    o_ref[...] = (y + b2_ref[...]).astype(o_ref.dtype)


def _ffn_kernel_chunked(x_ref, w1_ref, b1_ref, w2_ref, b2_ref, o_ref, acc_ref):
    """Hidden dim chunked over grid axis 1 (reduction), f32 accumulator scratch."""
    hk = pl.program_id(1)

    # fc1 partial over this hidden chunk (D-contraction is complete per chunk,
    # so the per-chunk ReLU is exact); bias + ReLU in f32 on the VPU.
    h = jnp.dot(x_ref[...], w1_ref[...], preferred_element_type=jnp.float32)
    h = jnp.maximum(h + b1_ref[...], 0.0)
    part = jnp.dot(h.astype(w2_ref.dtype), w2_ref[...],
                   preferred_element_type=jnp.float32)

    # Predicated first-write: avoids a full-tile zero store + add-of-zeros.
    @pl.when(hk == 0)
    def _first():
        acc_ref[...] = part

    @pl.when(hk > 0)
    def _rest():
        acc_ref[...] += part

    @pl.when(hk == pl.num_programs(1) - 1)
    def _finalize():
        o_ref[...] = (acc_ref[...] + b2_ref[...]).astype(o_ref.dtype)


# --------------------------------------------------------------------------- #
# Tiling / VMEM policy
# --------------------------------------------------------------------------- #
def _round_up(n, m):
    return ((n + m - 1) // m) * m


@functools.lru_cache(maxsize=1)
def _vmem_budget_bytes():
    """~0.8x the chip's VMEM capacity; conservative 64 MiB fallback (v7x per-TC)."""
    cap = 64 * 1024 * 1024
    try:
        info = pltpu.get_tpu_info()
        cap = int(getattr(info, "vmem_capacity_bytes", cap)) or cap
    except Exception:
        pass
    return int(0.8 * cap)


def _vmem_footprint_bytes(tile_b, tile_h, d_p, c_p, c_isz, out_isz, n_h):
    """Estimated live VMEM for one grid step (BlockSpec inputs/outputs are x2)."""
    fp = 2 * tile_b * d_p * c_isz            # x tile (double-buffered)
    fp += 2 * d_p * tile_h * c_isz           # w1 tile
    fp += 2 * tile_h * c_p * c_isz           # w2 tile
    fp += 2 * 8 * tile_h * 4                 # b1 (sublane-padded, f32)
    fp += 2 * 8 * c_p * 4                    # b2
    fp += 2 * tile_b * c_p * out_isz         # output tile
    fp += tile_b * tile_h * (4 + c_isz)      # f32 hidden intermediate + bf16 recast
    if n_h > 1:
        fp += tile_b * c_p * 4               # f32 accumulator scratch
    return fp


def _choose_tiles(B, d_p, h_p, c_p, c_isz, out_isz, tile_b, tile_h):
    budget = _vmem_budget_bytes()

    if tile_b is None:
        b8 = _round_up(B, 8)
        if b8 <= 512:
            tile_b = b8                      # single batch tile, zero pad waste
        else:
            tile_b = 128
            for cand in (512, 384, 256):     # largest tile with <~12.5% pad waste
                if (_round_up(B, cand) - B) * 8 <= B:
                    tile_b = cand
                    break

    if tile_h is None:
        # Prefer a single hidden tile: weights stay VMEM-resident and are DMA'd
        # from HBM exactly once per call.
        if _vmem_footprint_bytes(tile_b, h_p, d_p, c_p, c_isz, out_isz, 1) <= budget:
            tile_h = h_p
        else:
            tile_h = 128
            for cand in range(h_p - 128, 127, -128):
                if h_p % cand == 0 and _vmem_footprint_bytes(
                        tile_b, cand, d_p, c_p, c_isz, out_isz, 2) <= budget:
                    tile_h = cand
                    break

    # If still over budget (huge D/C), shrink the batch tile.
    while (tile_b > 8 and
           _vmem_footprint_bytes(tile_b, tile_h, d_p, c_p, c_isz, out_isz,
                                 max(1, h_p // tile_h)) > budget):
        tile_b = max(8, _round_up(tile_b // 2, 8))

    return int(tile_b), int(tile_h)


# --------------------------------------------------------------------------- #
# Parameter preparation (one-time; hoisted out of the per-call path)
# --------------------------------------------------------------------------- #
def prepare_ffn_params(w1, b1, w2, b2, *, compute_dtype=jnp.bfloat16, lane=128):
    """Pad/cast weights once at setup. w1:(D,H) (already transposed from torch's
    (H,D)), b1:(H,), w2:(H,C), b2:(C,). Returns (w1_p, b1_p, w2_p, b2_p, C)."""
    D, H = w1.shape
    H2, C = w2.shape
    assert H == H2
    d_p = _round_up(D, lane)
    h_p = _round_up(H, lane)
    c_p = _round_up(C, lane)
    w1_p = jnp.zeros((d_p, h_p), compute_dtype).at[:D, :H].set(
        w1.astype(compute_dtype))
    w2_p = jnp.zeros((h_p, c_p), compute_dtype).at[:H, :C].set(
        w2.astype(compute_dtype))
    # Biases stay f32: elementwise epilogue runs on the VPU in f32.
    b1_p = jnp.zeros((1, h_p), jnp.float32).at[0, :H].set(b1.astype(jnp.float32))
    b2_p = jnp.zeros((1, c_p), jnp.float32).at[0, :C].set(b2.astype(jnp.float32))
    return (w1_p, b1_p, w2_p, b2_p, int(C))


# --------------------------------------------------------------------------- #
# Forward pass
# --------------------------------------------------------------------------- #
@functools.partial(jax.jit, static_argnames=("out_features", "tile_b", "tile_h"))
def _ffn_call(x, w1_p, b1_p, w2_p, b2_p, out_features, tile_b, tile_h):
    B, D = x.shape
    d_p, h_p = w1_p.shape
    c_p = w2_p.shape[1]
    out_dtype = x.dtype
    c_dtype = w1_p.dtype
    c_isz = jnp.dtype(c_dtype).itemsize
    out_isz = jnp.dtype(out_dtype).itemsize

    b_p = _round_up(B, tile_b)
    n_b = b_p // tile_b
    n_h = h_p // tile_h

    # Only x is padded per call (weights were padded once at setup).
    xc = x.astype(c_dtype)
    if (b_p, d_p) != (B, D):
        x_p = jnp.zeros((b_p, d_p), c_dtype).at[:B, :D].set(xc)
    else:
        x_p = xc

    footprint = _vmem_footprint_bytes(tile_b, tile_h, d_p, c_p, c_isz, out_isz, n_h)
    vmem_limit = int(min(_vmem_budget_bytes(),
                         max(footprint + (4 << 20), 16 << 20)))

    # Weights are re-streamed per batch tile only when the hidden axis is chunked.
    weight_reads = 1 if n_h == 1 else n_b
    cost = pl.CostEstimate(
        flops=int(2 * b_p * (d_p * h_p + h_p * c_p)),
        transcendentals=0,
        bytes_accessed=int(b_p * d_p * c_isz
                           + weight_reads * (d_p * h_p + h_p * c_p) * c_isz
                           + weight_reads * (h_p + c_p) * 4
                           + b_p * c_p * out_isz),
    )

    if n_h == 1:
        # Weights VMEM-resident across all batch tiles (constant block indices).
        out_p = pl.pallas_call(
            _ffn_kernel_single,
            out_shape=jax.ShapeDtypeStruct((b_p, c_p), out_dtype),
            grid=(n_b,),
            in_specs=[
                pl.BlockSpec((tile_b, d_p), lambda i: (i, 0)),   # x (per batch tile)
                pl.BlockSpec((d_p, h_p), lambda i: (0, 0)),      # w1 (resident)
                pl.BlockSpec((1, h_p), lambda i: (0, 0)),        # b1 (resident)
                pl.BlockSpec((h_p, c_p), lambda i: (0, 0)),      # w2 (resident)
                pl.BlockSpec((1, c_p), lambda i: (0, 0)),        # b2 (resident)
            ],
            out_specs=pl.BlockSpec((tile_b, c_p), lambda i: (i, 0)),
            compiler_params=pltpu.CompilerParams(
                dimension_semantics=("parallel",),
                vmem_limit_bytes=vmem_limit),
            cost_estimate=cost,
        )(x_p, w1_p, b1_p, w2_p, b2_p)
    else:
        # TODO(synk): if profiling shows exposed weight DMA here, add
        # pipeline_mode=pl.Buffered(3) on the w1/w2 specs (VMEM permitting).
        out_p = pl.pallas_call(
            _ffn_kernel_chunked,
            out_shape=jax.ShapeDtypeStruct((b_p, c_p), out_dtype),
            grid=(n_b, n_h),
            in_specs=[
                pl.BlockSpec((tile_b, d_p), lambda i, k: (i, 0)),  # x
                pl.BlockSpec((d_p, tile_h), lambda i, k: (0, k)),  # w1 chunk
                pl.BlockSpec((1, tile_h), lambda i, k: (0, k)),    # b1 chunk
                pl.BlockSpec((tile_h, c_p), lambda i, k: (k, 0)),  # w2 chunk
                pl.BlockSpec((1, c_p), lambda i, k: (0, 0)),       # b2 (resident)
            ],
            out_specs=pl.BlockSpec((tile_b, c_p), lambda i, k: (i, 0)),
            scratch_shapes=[pltpu.VMEM((tile_b, c_p), jnp.float32)],
            compiler_params=pltpu.CompilerParams(
                # batch tiles independent -> "parallel" (megacore on v7x);
                # hidden axis is a reduction -> "arbitrary".
                dimension_semantics=("parallel", "arbitrary"),
                vmem_limit_bytes=vmem_limit),
            cost_estimate=cost,
        )(x_p, w1_p, b1_p, w2_p, b2_p)

    if (b_p, c_p) != (B, out_features):
        return out_p[:B, :out_features]
    return out_p


def feedforward(x, params, *, tile_b=None, tile_h=None, allow_small_bypass=False):
    """Forward pass of `Feedforward`: x:(B,D) -> (B,C). `params` from
    prepare_ffn_params. tile_b/tile_h override the auto tile selection."""
    w1_p, b1_p, w2_p, b2_p, out_features = params
    B = x.shape[0]
    d_p, h_p = w1_p.shape
    c_p = w2_p.shape[1]

    # Optional bypass: for tiny problems the lane-padding overhead beats any
    # kernel win; let XLA's fused dot handle it (disabled by default so the
    # Pallas path is always exercised when requested).
    if allow_small_bypass and 2 * B * (d_p * h_p + h_p * c_p) < (1 << 21):
        h = jnp.maximum(
            jnp.dot(x.astype(w1_p.dtype), w1_p,
                    preferred_element_type=jnp.float32) + b1_p, 0.0)
        y = jnp.dot(h.astype(w2_p.dtype), w2_p,
                    preferred_element_type=jnp.float32) + b2_p
        return y[:, :out_features].astype(x.dtype)

    c_isz = jnp.dtype(w1_p.dtype).itemsize
    out_isz = jnp.dtype(x.dtype).itemsize
    tb, th = _choose_tiles(B, d_p, h_p, c_p, c_isz, out_isz, tile_b, tile_h)
    return _ffn_call(x, w1_p, b1_p, w2_p, b2_p, out_features, tb, th)


# --------------------------------------------------------------------------- #
# Reference / init helpers
# --------------------------------------------------------------------------- #
def init_linear_params(key, in_features, out_features, dtype=jnp.float32):
    """torch.nn.Linear-style init (uniform(-k, k), k = 1/sqrt(fan_in)); weight
    is returned already transposed to (in_features, out_features)."""
    k = 1.0 / jnp.sqrt(jnp.asarray(in_features, dtype))
    wkey, bkey = jax.random.split(key)
    w = jax.random.uniform(wkey, (in_features, out_features), dtype, -k, k)
    b = jax.random.uniform(bkey, (out_features,), dtype, -k, k)
    return w, b


def _ref_ffn(x, w1, b1, w2, b2, compute_dtype=jnp.bfloat16):
    """Plain-JAX reference using the same bf16-operand / f32-accumulate recipe."""
    h = jnp.dot(x.astype(compute_dtype), w1.astype(compute_dtype),
                preferred_element_type=jnp.float32) + b1
    h = jnp.maximum(h, 0.0)
    return jnp.dot(h.astype(compute_dtype), w2.astype(compute_dtype),
                   preferred_element_type=jnp.float32) + b2


if __name__ == "__main__":
    # TODO(synk): fit()/predict() training loop (SGD, CrossEntropyLoss) is host-side
    # training logic, not a kernel concern; only the forward pass is implemented.
    # TODO(synk): optional fp8 weight cast on v7x is left out; bf16 operands with
    # f32 accumulation is the accuracy-safe default.

    root = jax.random.PRNGKey(0)
    kx, k1, k2, kx2, k3, k4 = jax.random.split(root, 6)

    # --- case 1: module-like small shapes -> single hidden tile, resident weights
    batch, input_dim, hidden_size, no_output_classes = 8, 32, 64, 16
    x = jax.random.normal(kx, (batch, input_dim), jnp.float32)
    w1, b1 = init_linear_params(k1, input_dim, hidden_size)
    w2, b2 = init_linear_params(k2, hidden_size, no_output_classes)
    params = prepare_ffn_params(w1, b1, w2, b2)   # one-time pad/cast

    out = jax.block_until_ready(feedforward(x, params))
    assert out.shape == (batch, no_output_classes)
    assert out.dtype == x.dtype

    ref = _ref_ffn(x, w1, b1, w2, b2)
    assert jnp.allclose(out, ref, atol=2e-3, rtol=2e-3), \
        float(jnp.max(jnp.abs(out - ref)))
    # Loose sanity check vs a full-f32 reference (bf16 MXU path).
    ref_f32 = jnp.maximum(x @ w1 + b1, 0.0) @ w2 + b2
    assert jnp.allclose(out, ref_f32, atol=5e-2, rtol=5e-2)

    # --- case 2: forces the chunked-hidden (2-axis grid) path + batch tiling + padding
    B2, D2, H2, C2 = 256, 96, 200, 10
    x2 = jax.random.normal(kx2, (B2, D2), jnp.float32)
    w1_2, b1_2 = init_linear_params(k3, D2, H2)
    w2_2, b2_2 = init_linear_params(k4, H2, C2)
    params2 = prepare_ffn_params(w1_2, b1_2, w2_2, b2_2)

    out2 = jax.block_until_ready(
        feedforward(x2, params2, tile_b=128, tile_h=128))
    ref2 = _ref_ffn(x2, w1_2, b1_2, w2_2, b2_2)
    assert out2.shape == (B2, C2)
    assert jnp.allclose(out2, ref2, atol=5e-3, rtol=5e-3), \
        float(jnp.max(jnp.abs(out2 - ref2)))

    print("KERNEL_OK")
</pallas_src>

<mosaic_0001>
module attributes {stable_mosaic.version = 11 : i64} {
  func.func @_ffn_kernel_single(%arg0: i32, %arg1: memref<8x128xbf16, #tpu.memory_space<vmem>>, %arg2: memref<128x128xbf16, #tpu.memory_space<vmem>>, %arg3: memref<1x128xf32, #tpu.memory_space<vmem>>, %arg4: memref<128x128xbf16, #tpu.memory_space<vmem>>, %arg5: memref<1x128xf32, #tpu.memory_space<vmem>>, %arg6: memref<8x128xf32, #tpu.memory_space<vmem>>) attributes {dimension_semantics = [#tpu.dimension_semantics<parallel>], iteration_bounds = array<i64: 1>, scalar_prefetch = 0 : i64, scratch_operands = 0 : i64, tpu.core_type = #tpu.core_type<tc>, window_params = [{transform_indices = @transform_0, window_bounds = array<i64: 8, 128>}, {pipeline_mode = #tpu.pipeline_mode<synchronous>, transform_indices = @transform_1, window_bounds = array<i64: 128, 128>}, {pipeline_mode = #tpu.pipeline_mode<synchronous>, transform_indices = @transform_2, window_bounds = array<i64: 1, 128>}, {pipeline_mode = #tpu.pipeline_mode<synchronous>, transform_indices = @transform_3, window_bounds = array<i64: 128, 128>}, {pipeline_mode = #tpu.pipeline_mode<synchronous>, transform_indices = @transform_4, window_bounds = array<i64: 1, 128>}, {transform_indices = @transform_5, window_bounds = array<i64: 8, 128>}]} {
    %c0 = arith.constant 0 : index
    %c0_0 = arith.constant 0 : index
    %0 = vector.load %arg1[%c0, %c0_0] : memref<8x128xbf16, #tpu.memory_space<vmem>>, vector<8x128xbf16>
    %c0_1 = arith.constant 0 : index
    %c0_2 = arith.constant 0 : index
    %1 = vector.load %arg2[%c0_1, %c0_2] : memref<128x128xbf16, #tpu.memory_space<vmem>>, vector<128x128xbf16>
    %cst = arith.constant dense<0.000000e+00> : vector<8x128xf32>
    %2 = tpu.matmul %0, %1, %cst {dimension_numbers = #tpu.dot_dimension_numbers<[1], [0], [0], [1], [0, 0, 1, 1], [], []>} : vector<8x128xbf16>, vector<128x128xbf16>, vector<8x128xf32> -> vector<8x128xf32>
    %c0_3 = arith.constant 0 : index
    %c0_4 = arith.constant 0 : index
    %3 = vector.load %arg3[%c0_3, %c0_4] : memref<1x128xf32, #tpu.memory_space<vmem>>, vector<1x128xf32>
    %4 = vector.broadcast %3 : vector<1x128xf32> to vector<8x128xf32>
    %5 = arith.addf %2, %4 : vector<8x128xf32>
    %cst_5 = arith.constant 0.000000e+00 : f32
    %6 = vector.broadcast %cst_5 : f32 to vector<8x128xf32>
    %7 = arith.maximumf %5, %6 : vector<8x128xf32>
    %8 = arith.truncf %7 : vector<8x128xf32> to vector<8x128xbf16>
    %c0_6 = arith.constant 0 : index
    %c0_7 = arith.constant 0 : index
    %9 = vector.load %arg4[%c0_6, %c0_7] : memref<128x128xbf16, #tpu.memory_space<vmem>>, vector<128x128xbf16>
    %cst_8 = arith.constant dense<0.000000e+00> : vector<8x128xf32>
    %10 = tpu.matmul %8, %9, %cst_8 {dimension_numbers = #tpu.dot_dimension_numbers<[1], [0], [0], [1], [0, 0, 1, 1], [], []>} : vector<8x128xbf16>, vector<128x128xbf16>, vector<8x128xf32> -> vector<8x128xf32>
    %c0_9 = arith.constant 0 : index
    %c0_10 = arith.constant 0 : index
    %11 = vector.load %arg5[%c0_9, %c0_10] : memref<1x128xf32, #tpu.memory_space<vmem>>, vector<1x128xf32>
    %12 = vector.broadcast %11 : vector<1x128xf32> to vector<8x128xf32>
    %13 = arith.addf %10, %12 : vector<8x128xf32>
    %c0_11 = arith.constant 0 : index
    %c0_12 = arith.constant 0 : index
    %14 = vector.load %arg6[%c0_11, %c0_12] : memref<8x128xf32, #tpu.memory_space<vmem>>, vector<8x128xf32>
    tpu.vector_store %arg6[%c0_11, %c0_12], %13 {strides = array<i32>} : memref<8x128xf32, #tpu.memory_space<vmem>>, vector<8x128xf32>,
    return
  }
  func.func @transform_0(%arg0: i32) -> (i32, i32) {
    %c0_i32 = arith.constant 0 : i32
    %c0_i32_0 = arith.constant 0 : i32
    return %arg0, %c0_i32 : i32, i32
  }
  func.func @transform_1(%arg0: i32) -> (i32, i32) {
    %c0_i32 = arith.constant 0 : i32
    %c0_i32_0 = arith.constant 0 : i32
    %c0_i32_1 = arith.constant 0 : i32
    return %c0_i32, %c0_i32_0 : i32, i32
  }
  func.func @transform_2(%arg0: i32) -> (i32, i32) {
    %c0_i32 = arith.constant 0 : i32
    %c0_i32_0 = arith.constant 0 : i32
    %c0_i32_1 = arith.constant 0 : i32
    return %c0_i32, %c0_i32_0 : i32, i32
  }
  func.func @transform_3(%arg0: i32) -> (i32, i32) {
    %c0_i32 = arith.constant 0 : i32
    %c0_i32_0 = arith.constant 0 : i32
    %c0_i32_1 = arith.constant 0 : i32
    return %c0_i32, %c0_i32_0 : i32, i32
  }
  func.func @transform_4(%arg0: i32) -> (i32, i32) {
    %c0_i32 = arith.constant 0 : i32
    %c0_i32_0 = arith.constant 0 : i32
    %c0_i32_1 = arith.constant 0 : i32
    return %c0_i32, %c0_i32_0 : i32, i32
  }
  func.func @transform_5(%arg0: i32) -> (i32, i32) {
    %c0_i32 = arith.constant 0 : i32
    %c0_i32_0 = arith.constant 0 : i32
    return %arg0, %c0_i32 : i32, i32
  }
}

</mosaic_0001>

<bundles_post_ra>
// kernel: _ffn_call.1
= control target key start
LH: loop header
LB: loop body
LE: loop exit
PB: predicated region body
PF: predicated region fallthrough
CT: control target
= control target key end

     0   :  { %10 = vsyncpa [#allocation3], 0  ;;  %s545_s0 = inlined_call_operand.vmem [shape: bf16[8,128], index: 0, kind: input, shape index: {}]   ;;  %s546_s1 = inlined_call_operand.hbm [shape: bf16[128,128], index: 1, kind: input, shape index: {}]   ;;  %s547_s2 = inlined_call_operand.vmem [shape: f32[1,128], index: 2, kind: input, shape index: {}]   ;;  %s548_s3 = inlined_call_operand.hbm [shape: bf16[128,128], index: 3, kind: input, shape index: {}]   ;;  %s549_s4 = inlined_call_operand.vmem [shape: f32[1,128], index: 4, kind: input, shape index: {}]   ;;  %s550_s5 = inlined_call_operand.hbm [shape: f32[8,128], index: 5, kind: output, shape index: {}]  }
   0x1   :  { %11 = vsyncpa [#allocation6], 0 }
   0x2   :  { %12 = vsyncpa [#allocation4], 0  ;;  %s463_s18 = smov [#allocation2]   ;;  %s391_s22 = scalar_lea.hbm %s546_s1, 1024 }
   0x3   :  { %s20_s19 = sshll.u32 %s463_s18, 4  ;;  %p392_p0 = scmp.ne.s32.totalorder %s546_s1, %s391_s22  ;;  %s21_s19 = int_to_ptr.vmem [resolvable:$true] %s20_s19 }
   0x4   :  { %p395_p1 = scmp.lt.u32.totalorder %s391_s22, %s546_s1 }
   0x6   :  { %p397_p2 = pnand %p395_p1, %p392_p0 }
   0x8   :  { %400 = shalt.err (!%p397_p2)
}
   0x9   :  { %s401_s27 = scalar_lea.vmem %s21_s19, 1024  ;;  %p406_p4 = scmp.lt.s32.totalorder %s21_s19, %s21_s19 }
   0xa   :  { %p402_p3 = scmp.ne.s32.totalorder %s21_s19, %s401_s27  ;;  %p407_p5 = scmp.lt.s32.totalorder %s401_s27, %s401_s27 }
   0xc   :  { %p408_p6 = por %p407_p5, %p406_p4 }
   0xe   :  { %p409_p7 = pnand %p408_p6, %p402_p3 }
  0x10   :  { %412 = shalt.err (!%p409_p7)
}
  0x11   :  { %s464_s28 = smov 64   ;;  %s465_s29 = smov 4  }
  0x12   :  { %26 = dma.hbm_to_vmem [thread:$0]  %s546_s1, 1024, %s21_s19, [#allocation3], %s464_s28, %s464_s28, %s465_s29  }
  0x13   :  { %s466_s7 = smov [#allocation5]   ;;  %s413_s11 = scalar_lea.hbm %s548_s3, 1024 }
  0x14   :  { %s34_s8 = sshll.u32 %s466_s7, 4  ;;  %p414_p8 = scmp.ne.s32.totalorder %s548_s3, %s413_s11  ;;  %s35_s8 = int_to_ptr.vmem [resolvable:$true] %s34_s8 }
  0x15   :  { %p417_p9 = scmp.lt.u32.totalorder %s413_s11, %s548_s3 }
  0x17   :  { %p419_p10 = pnand %p417_p9, %p414_p8 }
  0x19   :  { %422 = shalt.err (!%p419_p10)
}
  0x1a   :  { %s423_s16 = scalar_lea.vmem %s35_s8, 1024  ;;  %p428_p12 = scmp.lt.s32.totalorder %s35_s8, %s35_s8 }
  0x1b   :  { %p424_p11 = scmp.ne.s32.totalorder %s35_s8, %s423_s16  ;;  %p429_p13 = scmp.lt.s32.totalorder %s423_s16, %s423_s16 }
  0x1d   :  { %p430_p0 = por %p429_p13, %p428_p12 }
  0x1f   :  { %p431_p1 = pnand %p430_p0, %p424_p11 }
  0x21   :  { %434 = shalt.err (!%p431_p1)
}
  0x22   :  { %40 = dma.hbm_to_vmem [thread:$0]  %s548_s3, 1024, %s35_s8, [#allocation6], %s464_s28, %s464_s28, %s465_s29  }
  0x23   :  { %457 = dma.done.wait [#allocation3], 1024  }
  0x24   :  { %458 = vsyncadd [#allocation3], 4294966272 }
  0x25   :  { %459 = dma.done.wait [#allocation6], 1024  }
  0x26   :  { %460 = vsyncadd [#allocation6], 4294966272  ;;  %v467_v0 = vmov 0.0   ;;  %vm468_vm0 = vmmov 0   ;;  %v375_v1 = vld [vmem:[#allocation2] sm:$0xff]   ;;  %v376_v2 = vld [vmem:[#allocation2 + $0x8] sm:$0xff]  }
  0x27   :  { %328 = vmatprep.subr.bf16.mxu0 %v467_v0  ;;  %344 = vmatprep.mubr.msk.bf16.mxu0 %vm468_vm0, %v467_v0  ;;  %v377_v3 = vld [vmem:[#allocation2 + $0x10] sm:$0xff]   ;;  %v383_v4 = vld [vmem:[#allocation5] sm:$0xff]   ;;  %v378_v5 = vld [vmem:[#allocation2 + $0x18] sm:$0xff]   ;;  %s469_s22 = smov [#allocation7]  }
  0x28   :  { %348 = vmatprep.subr.bf16.mxu1 %v467_v0  ;;  %364 = vmatprep.mubr.msk.bf16.mxu1 %vm468_vm0, %v467_v0  ;;  %v384_v6 = vld [vmem:[#allocation5 + $0x8] sm:$0xff]   ;;  %v379_v7 = vld [vmem:[#allocation2 + $0x20] sm:$0xff]   ;;  %v385_v8 = vld [vmem:[#allocation5 + $0x10] sm:$0xff]   ;;  %s282_s23 = sshll.u32 %s469_s22, 4  ;;  %s283_s23 = int_to_ptr.vmem [resolvable:$true] %s282_s23 }
  0x29   :  { %329 = vmatpush3.bf16.msra.mxu0 %v375_v1  ;;  %349 = vmatpush3.bf16.msra.mxu1 %v383_v4  ;;  %v380_v9 = vld [vmem:[#allocation2 + $0x28] sm:$0xff]   ;;  %v386_v10 = vld [vmem:[#allocation5 + $0x18] sm:$0xff]   ;;  %v381_v11 = vld [vmem:[#allocation2 + $0x30] sm:$0xff]   ;;  %p440_p3 = scmp.lt.s32.totalorder %s283_s23, %s283_s23 }
  0x2a   :  { %330 = vmatprep.subr.bf16.mxu0 %v467_v0  ;;  %350 = vmatprep.subr.bf16.mxu1 %v467_v0  ;;  %v387_v12 = vld [vmem:[#allocation5 + $0x20] sm:$0xff]   ;;  %v382_v13 = vld [vmem:[#allocation2 + $0x38] sm:$0xff]   ;;  %v388_v14 = vld [vmem:[#allocation5 + $0x28] sm:$0xff]  }
  0x2b   :  { %v50_v15 = vld [vmem:[%s545_s0] sm:$0xf]  ;;  %v389_v16 = vld [vmem:[#allocation5 + $0x30] sm:$0xff]   ;;  %v390_v17 = vld [vmem:[#allocation5 + $0x38] sm:$0xff]  }
  0x2c   :  { %v292_v18 = vld [vmem:[%s547_s2] ss:$0 sm:$0xff]  ;;  %s435_s2 = scalar_lea.vmem %s283_s23, 128 }
  0x2d   :  { %331 = vmatpush3.bf16.msra.mxu0 %v376_v2  ;;  %351 = vmatpush3.bf16.msra.mxu1 %v384_v6  ;;  %v301_v26 = vld [vmem:[%s549_s4] ss:$0 sm:$0xff]  ;;  %p436_p2 = scmp.ne.s32.totalorder %s283_s23, %s435_s2  ;;  %p441_p4 = scmp.lt.s32.totalorder %s435_s2, %s435_s2 }
  0x2e   :  { %332 = vmatprep.subr.bf16.mxu0 %v467_v0  ;;  %352 = vmatprep.subr.bf16.mxu1 %v467_v0 }
  0x2f   :  { %p442_p5 = por %p441_p4, %p440_p3 }
  0x31   :  { %333 = vmatpush3.bf16.msra.mxu0 %v377_v3  ;;  %353 = vmatpush3.bf16.msra.mxu1 %v385_v8  ;;  %p443_p6 = pnand %p442_p5, %p436_p2 }
  0x32   :  { %334 = vmatprep.subr.bf16.mxu0 %v467_v0  ;;  %354 = vmatprep.subr.bf16.mxu1 %v467_v0 }
  0x35   :  { %335 = vmatpush3.bf16.msra.mxu0 %v378_v5  ;;  %355 = vmatpush3.bf16.msra.mxu1 %v386_v10 }
  0x36   :  { %336 = vmatprep.subr.bf16.mxu0 %v467_v0  ;;  %356 = vmatprep.subr.bf16.mxu1 %v467_v0 }
  0x39   :  { %337 = vmatpush3.bf16.msra.mxu0 %v379_v7  ;;  %357 = vmatpush3.bf16.msra.mxu1 %v387_v12 }
  0x3a   :  { %338 = vmatprep.subr.bf16.mxu0 %v467_v0  ;;  %358 = vmatprep.subr.bf16.mxu1 %v467_v0 }
  0x3d   :  { %339 = vmatpush3.bf16.msra.mxu0 %v380_v9  ;;  %359 = vmatpush3.bf16.msra.mxu1 %v388_v14 }
  0x3e   :  { %340 = vmatprep.subr.bf16.mxu0 %v467_v0  ;;  %360 = vmatprep.subr.bf16.mxu1 %v467_v0 }
  0x41   :  { %341 = vmatpush3.bf16.msra.mxu0 %v381_v11  ;;  %361 = vmatpush3.bf16.msra.mxu1 %v389_v16 }
  0x42   :  { %342 = vmatprep.subr.bf16.mxu0 %v467_v0  ;;  %362 = vmatprep.subr.bf16.mxu1 %v467_v0 }
  0x45   :  { %343 = vmatpush3.bf16.msra.mxu0 %v382_v13  ;;  %363 = vmatpush3.bf16.msra.mxu1 %v390_v17 }
  0x48   :  { %345 = vmatmul.mubr.bf16.vlgmr.msra.gmra.mrb[0].mxu0 %v50_v15 }
 0x11b   :  { %v156_v19 = vpop.f32.mrb[0].mxu0 }
 0x11c   :  { %v157_v20 = vadd.f32 %v292_v18, %v156_v19  ;;  %v346_v21 = vpop.f32.mrb[1].mxu0 }
 0x11d   :  { %v159_v22 = vpop.f32.mrb[2].mxu0 }
 0x11e   :  { %v162_v23 = vmax.f32 %v157_v20, 0.0  ;;  %v347_v24 = vpop.f32.mrb[3].mxu0 }
 0x120   :  { %v163_v25 = vpack.c.bf16 %v162_v23, %v162_v23 }
 0x122   :  { %365 = vmatmul.mubr.bf16.vlgmr.msra.gmra.mrb[0].mxu1 %v163_v25 }
 0x1f5   :  { %v269_v27 = vpop.f32.mrb[0].mxu1 }
 0x1f6   :  { %v270_v28 = vadd.f32 %v301_v26, %v269_v27  ;;  %v366_v29 = vpop.f32.mrb[1].mxu1 }
 0x1f7   :  { %v272_v30 = vpop.f32.mrb[2].mxu1 }
 0x1f8   :  { %275 = vst [vmem:[#allocation7] sm:$0xff] %v270_v28  ;;  %v367_v31 = vpop.f32.mrb[3].mxu1 }
 0x1f9   :  { %446 = shalt.err (!%p443_p6)
}
 0x1fa   :  { %s447_s4 = scalar_lea.hbm %s550_s5, 128 }
 0x1fb   :  { %p448_p7 = scmp.ne.s32.totalorder %s550_s5, %s447_s4  ;;  %p451_p8 = scmp.lt.u32.totalorder %s447_s4, %s550_s5 }
 0x1fd   :  { %p453_p9 = pnand %p451_p8, %p448_p7 }
 0x1ff   :  { %456 = shalt.err (!%p453_p9)
}
 0x200   :  { %285 = dma.vmem_to_hbm [thread:$0]  %s283_s23, 128, %s550_s5, [#allocation4]  }
 0x201   :  { %461 = dma.done.wait [#allocation4], 128  }
 0x202   :  { %462 = vsyncadd [#allocation4], 4294967168 }
 0x203   :  { %289 = vsyncpa [#allocation3], 1 }
 0x204   :  { %290 = vsyncpa [#allocation6], 1 }
 0x205   :  { %291 = vsyncpa [#allocation4], 1 }

</bundles_post_ra>
